<compile_context>
chip_gen: v5e
topology: v5e:2x2
jax: 0.10.0
libtpu: 0.0.40
codegen_flags: <defaults>
</compile_context>

<pallas_src>
import functools

import jax
import jax.numpy as jnp
from jax import lax
from jax.experimental import pallas as pl
from jax.experimental.pallas import tpu as pltpu


def _head_kernel(x_ref, w_ref, o_ref):
    # x_ref: (TB, T, C) batch tile of activations
    # w_ref: (C, 3*Hp) fused [Wk | Wq | Wv], each head zero-padded to Hp (Hp % 128 == 0)
    # o_ref: (TB, T, Hp) lane-dense output tile (caller slices [..., :head_size])
    TB, T, C = x_ref.shape
    Hp = w_ref.shape[1] // 3

    # --- fused QKV projection: one MXU matmul ---------------------------------------
    if T % 8 == 0:
        # Free sublane merge/split; split points 0/Hp/2Hp are 128-lane aligned -> views.
        x2d = x_ref[...].reshape(TB * T, C)
        qkv = jnp.dot(x2d, w_ref[...], preferred_element_type=jnp.float32)  # (TB*T, 3Hp)
        k = qkv[:, 0 * Hp:1 * Hp].reshape(TB, T, Hp)
        q = qkv[:, 1 * Hp:2 * Hp].reshape(TB, T, Hp)
        v = qkv[:, 2 * Hp:3 * Hp].reshape(TB, T, Hp)
    else:
        # Reshape would materialize a VMEM copy -> keep a batched dot instead.
        qkv = jnp.einsum("btc,cf->btf", x_ref[...], w_ref[...],
                         preferred_element_type=jnp.float32)                # (TB, T, 3Hp)
        k = qkv[..., 0 * Hp:1 * Hp]
        q = qkv[..., 1 * Hp:2 * Hp]
        v = qkv[..., 2 * Hp:3 * Hp]

    # --- scores: contract last dims directly (no k.T materialization) ----------------
    # Zero-padded head columns contribute nothing, so scores are exact.
    scale = jnp.float32(C ** -0.5)            # module scales by n_embd (C), not head_size
    s = jnp.einsum("btd,bsd->bts", q, k,
                   preferred_element_type=jnp.float32) * scale              # (TB, T, T)

    # --- causal softmax ----------------------------------------------------------------
    row = lax.broadcasted_iota(jnp.int32, (T, T), 0)
    col = lax.broadcasted_iota(jnp.int32, (T, T), 1)
    causal = col <= row                                   # 2D mask, broadcast over TB

    s = jnp.where(causal, s, jnp.float32(-1e30))          # mask BEFORE max -> denom >= 1
    m = jnp.max(s, axis=-1, keepdims=True)
    e = jnp.exp(s - m)                                    # masked entries underflow to 0
    denom = jnp.sum(e, axis=-1, keepdims=True)

    # EUP approximate reciprocal + one Newton step (rel. error ~1e-7, effectively exact),
    # keeping the divide off the VALU slot.
    inv = pl.reciprocal(denom, approx=True)
    inv = inv * (jnp.float32(2.0) - denom * inv)
    p = e * inv                                           # (TB, T, T)

    out = jnp.einsum("bts,bsd->btd", p, v,
                     preferred_element_type=jnp.float32)  # (TB, T, Hp)
    o_ref[...] = out.astype(o_ref.dtype)                  # 128-lane-dense unmasked stores


def _round_up(n, m):
    return ((n + m - 1) // m) * m


def fuse_qkv_weights(wk, wq, wv):
    """Zero-pad each (C, H) weight to a 128-lane multiple and concatenate -> (C, 3*Hp).

    Call ONCE (parameter transform), not per forward.
    """
    C, H = wk.shape
    Hp = max(128, _round_up(H, 128))
    pad = ((0, 0), (0, Hp - H))
    return jnp.concatenate(
        [jnp.pad(wk, pad), jnp.pad(wq, pad), jnp.pad(wv, pad)], axis=1)


def _pick_batch_tile(B, T, target_rows=512):
    """Largest divisor of B with TB*T <= target_rows, keeping >= 2 grid steps for v7x."""
    tb = max(1, min(B, target_rows // max(T, 1)))
    if B >= 2:
        tb = min(tb, B // 2)        # >= 2 grid steps so both v7x TensorCores get work
    tb = max(tb, 1)
    while B % tb:
        tb -= 1
    return tb


@functools.partial(jax.jit, static_argnums=(2,))
def head_forward(x, w_qkv, head_size):
    """x: (B, T, C) f32; w_qkv: (C, 3*Hp) fused+padded weights -> (B, T, head_size) f32."""
    B, T, C = x.shape
    Hp = w_qkv.shape[1] // 3
    TB = _pick_batch_tile(B, T)

    cost = pl.CostEstimate(
        flops=B * (2 * T * C * 3 * Hp + 4 * T * T * Hp),
        transcendentals=B * T * T + B * T,
        bytes_accessed=(x.size + w_qkv.size + B * T * Hp) * 4,
    )

    out_padded = pl.pallas_call(
        _head_kernel,
        out_shape=jax.ShapeDtypeStruct((B, T, Hp), jnp.float32),
        grid_spec=pltpu.PrefetchScalarGridSpec(
            num_scalar_prefetch=0,
            grid=(B // TB,),
            in_specs=[
                pl.BlockSpec((TB, T, C), lambda b: (b, 0, 0)),   # batch tile of x
                pl.BlockSpec((C, 3 * Hp), lambda b: (0, 0)),     # fused weights (resident)
            ],
            out_specs=pl.BlockSpec((TB, T, Hp), lambda b: (b, 0, 0)),
        ),
        compiler_params=pltpu.CompilerParams(
            dimension_semantics=("parallel",),
        ),
        cost_estimate=cost,
    )(x, w_qkv)

    return out_padded[..., :head_size]


def _reference(x, wk, wq, wv):
    """Pure-JAX reference matching the PyTorch forward exactly."""
    B, T, C = x.shape
    k = x @ wk
    q = x @ wq
    v = x @ wv
    wei = jnp.einsum("bth,bsh->bts", q, k) * (C ** -0.5)
    tril = jnp.tril(jnp.ones((T, T), dtype=bool))
    wei = jnp.where(tril, wei, -jnp.inf)
    wei = jax.nn.softmax(wei, axis=-1)
    return jnp.einsum("bts,bsh->bth", wei, v)


if __name__ == "__main__":
    # Shapes consistent with the module: batch=2, seq(T)=block_size=8, n_embd=32, head_size=16.
    B, T, C, H = 2, 8, 32, 16

    key = jax.random.PRNGKey(0)
    kx, kk, kq, kv = jax.random.split(key, 4)

    x = jax.random.normal(kx, (B, T, C), dtype=jnp.float32)
    # Deterministic parameter init (stand-in for nn.Linear weights), shape (C, H).
    wk = jax.random.normal(kk, (C, H), dtype=jnp.float32) * (C ** -0.5)
    wq = jax.random.normal(kq, (C, H), dtype=jnp.float32) * (C ** -0.5)
    wv = jax.random.normal(kv, (C, H), dtype=jnp.float32) * (C ** -0.5)

    # Fuse + lane-pad the weights once (parameter transform, not per-forward work).
    w_qkv = fuse_qkv_weights(wk, wq, wv)

    out = head_forward(x, w_qkv, H)
    out = jax.block_until_ready(out)

    ref = _reference(x, wk, wq, wv)
    assert out.shape == (B, T, H)
    assert jnp.allclose(out, ref, atol=1e-4, rtol=1e-4), "mismatch vs reference"

    print("KERNEL_OK")
</pallas_src>

<mosaic_0001>
module attributes {stable_mosaic.version = 11 : i64} {
  func.func @_head_kernel(%arg0: i32, %arg1: memref<1x8x32xf32, #tpu.memory_space<vmem>>, %arg2: memref<32x384xf32, #tpu.memory_space<vmem>>, %arg3: memref<1x8x128xf32, #tpu.memory_space<vmem>>) attributes {dimension_semantics = [#tpu.dimension_semantics<parallel>], iteration_bounds = array<i64: 2>, scalar_prefetch = 0 : i64, scratch_operands = 0 : i64, tpu.core_type = #tpu.core_type<tc>, window_params = [{transform_indices = @transform_0, window_bounds = array<i64: 1, 8, 32>}, {pipeline_mode = #tpu.pipeline_mode<synchronous>, transform_indices = @transform_1, window_bounds = array<i64: 32, 384>}, {transform_indices = @transform_2, window_bounds = array<i64: 1, 8, 128>}]} {
    %c0 = arith.constant 0 : index
    %c0_0 = arith.constant 0 : index
    %c0_1 = arith.constant 0 : index
    %0 = vector.load %arg1[%c0, %c0_0, %c0_1] : memref<1x8x32xf32, #tpu.memory_space<vmem>>, vector<1x8x32xf32>
    %1 = vector.shape_cast %0 : vector<1x8x32xf32> to vector<8x32xf32>
    %c0_2 = arith.constant 0 : index
    %c0_3 = arith.constant 0 : index
    %2 = vector.load %arg2[%c0_2, %c0_3] : memref<32x384xf32, #tpu.memory_space<vmem>>, vector<32x384xf32>
    %cst = arith.constant dense<0.000000e+00> : vector<8x384xf32>
    %3 = tpu.matmul %1, %2, %cst {dimension_numbers = #tpu.dot_dimension_numbers<[1], [0], [0], [1], [0, 0, 1, 1], [], []>} : vector<8x32xf32>, vector<32x384xf32>, vector<8x384xf32> -> vector<8x384xf32>
    %4 = vector.extract_strided_slice %3 {offsets = [0, 0], sizes = [8, 128], strides = [1, 1]} : vector<8x384xf32> to vector<8x128xf32>
    %5 = vector.shape_cast %4 : vector<8x128xf32> to vector<1x8x128xf32>
    %6 = vector.extract_strided_slice %3 {offsets = [0, 128], sizes = [8, 128], strides = [1, 1]} : vector<8x384xf32> to vector<8x128xf32>
    %7 = vector.shape_cast %6 : vector<8x128xf32> to vector<1x8x128xf32>
    %8 = vector.extract_strided_slice %3 {offsets = [0, 256], sizes = [8, 128], strides = [1, 1]} : vector<8x384xf32> to vector<8x128xf32>
    %9 = vector.shape_cast %8 : vector<8x128xf32> to vector<1x8x128xf32>
    "tpu.trace_start"() <{level = 10 : i32, message = "btd,bsd->bts"}> : () -> ()
    %cst_4 = arith.constant dense<0.000000e+00> : vector<1x8x8xf32>
    %10 = tpu.matmul %7, %5, %cst_4 {dimension_numbers = #tpu.dot_dimension_numbers<[2], [2], [1], [1], [0, 0, 0, 1, 1, 1], [0], [0]>} : vector<1x8x128xf32>, vector<1x8x128xf32>, vector<1x8x8xf32> -> vector<1x8x8xf32>
    "tpu.trace_stop"() : () -> ()
    %cst_5 = arith.constant 0.176776692 : f32
    %11 = vector.broadcast %cst_5 : f32 to vector<1x8x8xf32>
    %12 = arith.mulf %10, %11 : vector<1x8x8xf32>
    %13 = tpu.iota {dimensions = array<i32: 0>} : vector<8x8xi32>
    %14 = tpu.iota {dimensions = array<i32: 1>} : vector<8x8xi32>
    %15 = arith.cmpi sle, %14, %13 : vector<8x8xi32>
    %cst_6 = arith.constant -1.000000e+30 : f32
    %16 = vector.shape_cast %15 : vector<8x8xi1> to vector<1x8x8xi1>
    %17 = vector.broadcast %cst_6 : f32 to vector<1x8x8xf32>
    %18 = arith.select %16, %12, %17 : vector<1x8x8xi1>, vector<1x8x8xf32>
    %cst_7 = arith.constant dense<0xFF800000> : vector<1x8xf32>
    %19 = vector.multi_reduction <maximumf>, %18, %cst_7 [2] : vector<1x8x8xf32> to vector<1x8xf32>
    %20 = vector.shape_cast %19 : vector<1x8xf32> to vector<1x8x1xf32>
    %21 = vector.broadcast %20 : vector<1x8x1xf32> to vector<1x8x8xf32>
    %22 = arith.subf %18, %21 : vector<1x8x8xf32>
    %23 = math.exp %22 : vector<1x8x8xf32>
    %cst_8 = arith.constant dense<0.000000e+00> : vector<1x8xf32>
    %24 = vector.multi_reduction <add>, %23, %cst_8 [2] : vector<1x8x8xf32> to vector<1x8xf32>
    %25 = vector.shape_cast %24 : vector<1x8xf32> to vector<1x8x1xf32>
    %26 = tpu.reciprocal %25 {approx = true} : vector<1x8x1xf32> -> vector<1x8x1xf32>
    %27 = arith.mulf %25, %26 : vector<1x8x1xf32>
    %cst_9 = arith.constant 2.000000e+00 : f32
    %28 = vector.broadcast %cst_9 : f32 to vector<1x8x1xf32>
    %29 = arith.subf %28, %27 : vector<1x8x1xf32>
    %30 = arith.mulf %26, %29 : vector<1x8x1xf32>
    %31 = vector.broadcast %30 : vector<1x8x1xf32> to vector<1x8x8xf32>
    %32 = arith.mulf %23, %31 : vector<1x8x8xf32>
    "tpu.trace_start"() <{level = 10 : i32, message = "bts,bsd->btd"}> : () -> ()
    %cst_10 = arith.constant dense<0.000000e+00> : vector<1x8x128xf32>
    %33 = tpu.matmul %32, %9, %cst_10 {dimension_numbers = #tpu.dot_dimension_numbers<[2], [1], [1], [2], [0, 0, 0, 1, 1, 2], [0], [0]>} : vector<1x8x8xf32>, vector<1x8x128xf32>, vector<1x8x128xf32> -> vector<1x8x128xf32>
    "tpu.trace_stop"() : () -> ()
    %c0_11 = arith.constant 0 : index
    %c0_12 = arith.constant 0 : index
    %c0_13 = arith.constant 0 : index
    %34 = vector.load %arg3[%c0_11, %c0_12, %c0_13] : memref<1x8x128xf32, #tpu.memory_space<vmem>>, vector<1x8x128xf32>
    tpu.vector_store %arg3[%c0_11, %c0_12, %c0_13], %33 {strides = array<i32>} : memref<1x8x128xf32, #tpu.memory_space<vmem>>, vector<1x8x128xf32>,
    return
  }
  func.func @transform_0(%arg0: i32) -> (i32, i32, i32) {
    %c0_i32 = arith.constant 0 : i32
    %c0_i32_0 = arith.constant 0 : i32
    %c0_i32_1 = arith.constant 0 : i32
    return %arg0, %c0_i32, %c0_i32_0 : i32, i32, i32
  }
  func.func @transform_1(%arg0: i32) -> (i32, i32) {
    %c0_i32 = arith.constant 0 : i32
    %c0_i32_0 = arith.constant 0 : i32
    %c0_i32_1 = arith.constant 0 : i32
    return %c0_i32, %c0_i32_0 : i32, i32
  }
  func.func @transform_2(%arg0: i32) -> (i32, i32, i32) {
    %c0_i32 = arith.constant 0 : i32
    %c0_i32_0 = arith.constant 0 : i32
    %c0_i32_1 = arith.constant 0 : i32
    return %arg0, %c0_i32, %c0_i32_0 : i32, i32, i32
  }
}

</mosaic_0001>

<bundles_post_ra>
// kernel: head_forward.1
= control target key start
LH: loop header
LB: loop body
LE: loop exit
PB: predicated region body
PF: predicated region fallthrough
CT: control target
= control target key end

     0   :  { %7 = vsyncpa [#allocation3], 0  ;;  %s794_s0 = inlined_call_operand.hbm [shape: f32[2,8,32], index: 0, kind: input, shape index: {}]   ;;  %s795_s1 = inlined_call_operand.hbm [shape: f32[32,384], index: 1, kind: input, shape index: {}]   ;;  %s796_s2 = inlined_call_operand.hbm [shape: f32[2,8,128], index: 2, kind: output, shape index: {}]  }
   0x1   :  { %9 = vsyncpa [#allocation3 + $0x1], 0 }
   0x2   :  { %10 = vsyncpa [#allocation6], 0 }
   0x3   :  { %11 = vsyncpa [#allocation4], 0 }
   0x4   :  { %13 = vsyncpa [#allocation4 + $0x1], 0  ;;  %s648_s9 = smov 0   ;;  %s650_s10 = smov 0  }
   0x5   :  { %s652_s11 = smov 0   ;;  %s654_s12 = smov 0  }
   0x6 LB: > { %s108_s15 = sshll.u32 %s795_s1, 4  ;;  %s672_s16 = sadd.s32 4294967295, %s628_s12   ;;  %s628_s12 = sphi %s654_s12, %s806_s12   ;;  %s624_s11 = sphi %s652_s11, %s805_s11   ;;  %s620_s10 = sphi %s650_s10, %s804_s10   ;;  %s616_s9 = sphi %s648_s9, %s803_s9   ;;  %s109_s15 = int_to_ptr.hbm [resolvable:$true] %s108_s15 }
   0x7   : > { %p418_p0 = scmp.ge.s32.totalorder %s628_s12, 1  ;;  %p40_p1 = scmp.eq.s32.totalorder %s672_s16, 0 }
   0x8   : > { %p97_p2 = scmp.lt.s32.totalorder %s628_s12, 3  ;;  %s630_s18 = smov [#allocation5]  }
   0x9   : > { %s110_s19 = sshll.u32 %s630_s18, 4  ;;  %s631_s20 = smov 384   ;;  %s111_s19 = int_to_ptr.vmem [resolvable:$true] %s110_s19 }
   0xa   : > { %p677_p3 = pnand %p418_p0, %p97_p2  ;;  %s632_s21 = smov 24  }
   0xb   : > { %s417_s22 = sadd.s32 4294967294, %s628_s12   ;;  %s688_s23 = sadd.s32 1, %s628_s12  }
   0xc   : > { %p443_p4 = pneg %p677_p3  ;;  %s26_s24 = sadd.s32 1, %s624_s11 }
   0xd   : > { %s23_s25 = ssub.s32 %s628_s12, %s688_s23  ;;  %p33_p7 = scmp.ne.s32.totalorder %s624_s11, %s620_s10 }
   0xe   : > { %p444_p6 = pnand %p443_p4, %p40_p1  ;;  %p24_p8 = scmp.eq.s32.totalorder %s23_s25, 0 }
   0xf   : > { %p34_p9 = scmp.eq.s32.totalorder %s628_s12, 0  ;;  %p39_p10 = scmp.ne.s32.totalorder %s620_s10, %s616_s9 }
  0x10   : > { %446 = dma.hbm_to_vmem [thread:$0]  (!%p444_p6), %s109_s15, 1536, %s111_s19, [#allocation6], %s631_s20, %s631_s20, %s632_s21  }
  0x11   : > { %p84_p11 = scmp.eq.s32.totalorder %s672_s16, 1  ;;  %p704_p12 = por %p40_p1, %p39_p10 }
  0x12   : > { %s700_s26 = scalar_select %p24_p8, %s624_s11, %s26_s24  }
  0x13   : > { %p708_p13 = por %p84_p11, %p33_p7  ;;  %p90_p0 = scmp.eq.s32.totalorder %s417_s22, 1 }
  0x14   : > { %p35_p2 = por %p34_p9, %p33_p7  ;;  %s124_s29 = sand.u32 1, %s624_s11  }
  0x15   : > { %p713_p4 = por %p90_p0, %p39_p10  ;;  %p456_p6 = scmp.lt.s32.totalorder %s628_s12, 2 }
  0x16   : > { %s421_s3 = sshll.u32 %s124_s29, 3  ;;  %s422_s4 = sshll.u32 %s628_s12, 3 }
  0x17   : > { %s132_s7 = scalar_lea.hbm %s794_s0, %s422_s4  ;;  %s128_s13 = scalar_lea.vmem [#allocation2], %s421_s3 }
  0x18   : > { %s134_s8 = sshll.u32 %s132_s7, 4  ;;  %s136_s14 = sshll.u32 %s128_s13, 4  ;;  %s135_s8 = int_to_ptr.hbm [resolvable:$true] %s134_s8  ;;  %s137_s14 = int_to_ptr.vmem [resolvable:$true] %s136_s14 }
  0x19   : > { %p722_p8 = pnand %p456_p6, %p35_p2  ;;  %s125_s18 = scalar_lea.sflag [#allocation3], %s124_s29 }
  0x1a   : > { %s528_s19 = sshra.s32 %s135_s8, 4  ;;  %s535_s24 = scalar_lea.hbm %s794_s0, 16  ;;  %s529_s19 = int_to_ptr.hbm [resolvable:$true] %s528_s19 }
  0x1b   : > { %s530_s20 = scalar_lea.hbm %s529_s19, 8  ;;  %p532_p9 = pneg %p722_p8 }
  0x1c   : > { %p531_p7 = scmp.ne.s32.totalorder %s529_s19, %s530_s20  ;;  %p536_p0 = scmp.lt.s32.totalorder %s529_s19, %s794_s0 }
  0x1d   : > { %p537_p2 = scmp.lt.s32.totalorder %s535_s24, %s530_s20 }
  0x1e   : > { %p533_p10 = pnand %p532_p9, %p531_p7 }
  0x1f   : > { %p538_p6 = por %p537_p2, %p536_p0 }
  0x20   : > { %p534_p11 = pneg %p533_p10 }
  0x22   : > { %p539_p5 = pnand %p538_p6, %p534_p11 }
  0x24   : > { %542 = shalt.err (!%p539_p5)
}
  0x25   : > { %450 = dma.hbm_to_vmem [thread:$0]  (!%p722_p8), %s135_s8, 128, %s137_s14, %s125_s18  }
  0x26   : > { %145 = sbr.rel (%p677_p3) target bundleno = 713 (0x2c9), region = 28  ;;  %s739_s29 = sand.u32 (!%p677_p3), 1, %s620_s10  }
  0x27   : > { %s424_s4 = sshll.u32 (!%p677_p3), %s739_s29, 3  ;;  %s148_s5 = scalar_lea.sflag (!%p677_p3), [#allocation3], %s739_s29 }
  0x28   : > { %s151_s6 = scalar_lea.vmem (!%p677_p3), [#allocation2], %s424_s4 }
  0x2b   : > { %603 = dma.done.wait (%p704_p12), %s148_s5, 128  }
  0x2c   : > { %605 = vsyncadd (%p704_p12), %s148_s5, 4294967168 }
  0x2d   : > { %607 = dma.done.wait (%p40_p1), [#allocation6], 1536  }
  0x2e   : > { %609 = vsyncadd (%p40_p1), [#allocation6], 4294965760  ;;  %v188_v0 = vld [vmem:[#allocation5 + $0x48] sm:$0xff]  ;;  %v185_v1 = vld [vmem:[#allocation5 + $0x30] sm:$0xff]  ;;  %vm191_vm0 = vcmask 261120   ;;  %v276_v13 = vlaneseq  ;;  %vm282_vm2 = vcmask 64512  }
  0x2f   : > { %v189_v2 = vld [vmem:[#allocation5 + $0x50] sm:$0xff]  ;;  %207 = vmatpush.msra.mxu0 %v188_v0  ;;  %v186_v3 = vld [vmem:[#allocation5 + $0x38] sm:$0xff]  ;;  %v183_v5 = vld [vmem:[#allocation5 + $0x20] sm:$0xff]  ;;  %s432_s17 = sshll.u32 %s672_s16, 3  ;;  %s177_s13 = scalar_lea.vmem [#allocation7], %s424_s4 }
  0x30   : > { %227 = vmatpush.msra.mxu1 %v189_v2  ;;  %v182_v4 = vld [vmem:[#allocation5 + $0x18] sm:$0xff]  ;;  %v179_v6 = vld [vmem:[#allocation5] sm:$0xff]  ;;  %v180_v7 = vld [vmem:[#allocation5 + $0x8] sm:$0xff]  ;;  %v277_v14 = vshrl.u32 %v276_v13, 7  ;;  %v279_v15 = vand.u32 127, %v276_v13  ;;  %s332_s8 = scalar_lea.hbm %s796_s2, %s432_s17  ;;  %s334_s14 = sshll.u32 %s177_s13, 4  ;;  %s335_s14 = int_to_ptr.vmem [resolvable:$true] %s334_s14 }
  0x31   : > { %208 = vmatpush.msra.mxu0 %v185_v1  ;;  %v178_v8 = vld [vmem:[%s151_s6] sm:$0xff]  ;;  %v187_v12 = vld [vmem:[#allocation5 + $0x40] sm:$0xff]  ;;  %v184_v20 = vld [vmem:[#allocation5 + $0x28] sm:$0xff]  ;;  %s336_s15 = sshll.u32 %s332_s8, 4  ;;  %s322_s18 = scalar_lea.sflag [#allocation4], %s739_s29  ;;  %s337_s15 = int_to_ptr.hbm [resolvable:$true] %s336_s15 }
  0x32   : > { %228 = vmatpush.msra.mxu1 %v186_v3  ;;  %v190_v11 = vld [vmem:[#allocation5 + $0x58] sm:$0xff]  ;;  %vm280_vm1 = vcmp.le.s32.totalorder %v279_v15, %v277_v14  ;;  %v181_v21 = vld [vmem:[#allocation5 + $0x10] sm:$0xff]  ;;  %s572_s19 = sshra.s32 %s337_s15, 4  ;;  %s578_s22 = scalar_lea.hbm %s796_s2, 16  ;;  %s573_s19 = int_to_ptr.hbm [resolvable:$true] %s572_s19 }
  0x33   : > { %209 = vmatpush.msra.mxu0 %v182_v4  ;;  %247 = vmatpush.msra.mxu2 %v190_v11  ;;  %s574_s20 = scalar_lea.hbm %s573_s19, 8  ;;  %p579_p12 = scmp.lt.s32.totalorder %s573_s19, %s796_s2 }
  0x34   : > { %229 = vmatpush.msra.mxu1 %v183_v5  ;;  %p575_p1 = scmp.ne.s32.totalorder %s573_s19, %s574_s20  ;;  %p580_p8 = scmp.lt.s32.totalorder %s578_s22, %s574_s20 }
  0x35   : > { %210 = vmatpush.msra.mxu0 %v179_v6  ;;  %248 = vmatpush.msra.mxu2 %v187_v12 }
  0x36   : > { %230 = vmatpush.msra.mxu1 %v180_v7  ;;  %427 = vmatmul.msk.f32.vlgmr.msra.gmra.mxu0 %vm191_vm0, %v178_v8  ;;  %p576_p3 = pnand %p575_p1, %p708_p13  ;;  %p581_p7 = por %p580_p8, %p579_p12 }
  0x37   : > { %428 = vmatmul.msk.f32.vlgmr.msra.gmra.mxu1 %vm191_vm0, %v178_v8  ;;  %249 = vmatpush.msra.mxu2 %v184_v20 }
  0x38   : > { %p577_p5 = pneg %p576_p3 }
  0x39   : > { %250 = vmatpush.msra.mxu2 %v181_v21 }
  0x3a   : > { %429 = vmatmul.msk.f32.vlgmr.msra.gmra.mxu2 %vm191_vm0, %v178_v8  ;;  %p582_p9 = pnand %p581_p7, %p577_p5 }
  0xb3   : > { %v212_v9 = vpop.f32.mrf.mxu0 }
  0xb4   : > { %270 = vmatpush.xpose.msra.mxu3 %v212_v9  ;;  %v232_v10 = vpop.f32.mrf.mxu1 }
  0xb7   : > { %271 = vmatmul.f32.vlgmr.msra.gmra.mxu3 %v232_v10 }
  0xbd   : > { %v252_v27 = vpop.f32.mrf.mxu2 }
  0xbe   : > { %315 = vmatpush.msrb.mxu3 %v252_v27 }
 0x13a   : > { %v272_v16 = vpop.f32.mrf.mxu3 }
 0x13b   : > { %v275_v17 = vmul.f32 0.17677669, %v272_v16 }
 0x13d   : > { %v281_v18 = vsel %vm280_vm1, %v275_v17, -1e+30 }
 0x13e   : > { %v283_v19 = vsel %vm282_vm2, %v281_v18, -inf }
 0x13f   : > { %284 = vmax.xlane.f32.xlu0 %v283_v19 }
 0x1b2   : > { %v285_v22 = vpop.xlane.xlu0 %284 }
 0x1b3   : > { %v286_v23 = vsub.f32 %v281_v18, %v285_v22 }
 0x1b5   : > { %v287_v24 = vmul.f32 1.442695, %v286_v23 }
 0x1b7   : > { %494 = vpow2.f32 %v287_v24 }
 0x1bd   : > { %v495_v25 = vpop.eup %494 }
 0x1be   : > { %v289_v26 = vsel %vm282_vm2, %v495_v25, 0.0 }
 0x1bf   : > { %290 = vadd.xlane.f32.xlu0 %v289_v26 }
 0x232   : > { %v291_v28 = vpop.xlane.xlu0 %290 }
 0x233   : > { %496 = vrcp.f32 %v291_v28 }
 0x239   : > { %v497_v29 = vpop.eup %496 }
 0x23a   : > { %v293_v30 = vmul.f32 %v497_v29, %v291_v28 }
 0x23c   : > { %v294_v31 = vsub.f32 2.0, %v293_v30 }
 0x23e   : > { %v295_v32 = vmul.f32 %v497_v29, %v294_v31 }
 0x240   : > { %v296_v33 = vmul.f32 %v495_v25, %v295_v32 }
 0x242   : > { %430 = vmatmul.msk.f32.vlgmr.msrb.gmra.mxu3 %vm282_vm2, %v296_v33 }
 0x2c5   : > { %v317_v34 = vpop.f32.mrf.mxu3 }
 0x2c6   : > { %320 = vst [vmem:[%s177_s13] sm:$0xff] %v317_v34 }
 0x2c7   : > { %585 = shalt.err (!%p582_p9)
}
 0x2c8   : > { %441 = dma.vmem_to_hbm [thread:$0]  (%p708_p13), %s335_s14, 128, %s337_s15, %s322_s18  }
 0x2c9 PF: > { %s348_s3 = sand.u32 1, %s616_s9   ;;  %p802_p10 = scmp.ge.s32.totalorder %s628_s12, 2 }
 0x2ca   : > { %s349_s29 = scalar_lea.sflag [#allocation4], %s348_s3 }
 0x2cb   : > { %p452_p11 = pnand %p802_p10, %p713_p4 }
 0x2cd   : > { %p453_p0 = pneg %p452_p11 }
 0x2cf   : > { %611 = dma.done.wait (%p453_p0), %s349_s29, 128  }
 0x2d0   : > { %613 = vsyncadd (%p453_p0), %s349_s29, 4294967168  ;;  %p16_p2 = scmp.ge.s32.totalorder %s688_s23, 4   ;;  %s803_s9 = smov %s620_s10 }
 0x2d1   : > { %s804_s10 = smov %s624_s11  ;;  %s805_s11 = smov %s700_s26 }
 0x2d2   : > { %s806_s12 = smov %s688_s23  ;;  %18 = sbr.rel (!%p16_p2) target bundleno = 6 (0x6), region = 77 }
 0x2d7   :  { %355 = vsyncpa [#allocation3], 1 }
 0x2d8   :  { %357 = vsyncpa [#allocation3 + $0x1], 1 }
 0x2d9   :  { %358 = vsyncpa [#allocation6], 1 }
 0x2da   :  { %359 = vsyncpa [#allocation4], 1 }
 0x2db   :  { %361 = vsyncpa [#allocation4 + $0x1], 1 }

</bundles_post_ra>
